<compile_context>
chip_gen: v5e
topology: v5e:2x2
jax: 0.10.0
libtpu: 0.0.40
codegen_flags: <defaults>
</compile_context>

<pallas_src>
import math

import jax
import jax.numpy as jnp
from jax.experimental import pallas as pl
from jax.experimental.pallas import tpu as pltpu

NUM_INPUTS = 28 * 28    # 784
HIDDEN1 = 128
HIDDEN2 = 64
NUM_OUTPUTS = 10

# Lane-dense (multiple-of-128) padded sizes used inside the kernel.
HIDDEN2_PAD = 128
OUT_PAD = 128

TB_MAX = 1024           # max batch-tile rows per grid step


def _round_up(n, m):
    return ((n + m - 1) // m) * m


def _mlp_kernel(x_ref, w1_ref, b1_ref, w2_ref, b2_ref, w3_ref, b3_ref, o_ref):
    # x tile arrives in f32; cast to bf16 in-kernel (hidden under DMA).
    x = x_ref[...].astype(jnp.bfloat16)

    h1 = jnp.dot(x, w1_ref[...], preferred_element_type=jnp.float32) + b1_ref[...]
    h2 = jnp.dot(h1.astype(jnp.bfloat16), w2_ref[...],
                 preferred_element_type=jnp.float32) + b2_ref[...]
    h3 = jnp.dot(h2.astype(jnp.bfloat16), w3_ref[...],
                 preferred_element_type=jnp.float32) + b3_ref[...]

    # Lane-dense (TB, 128) bf16 store; real logits are the first 10 columns.
    o_ref[...] = h3.astype(jnp.bfloat16)


def init_params(key):
    """nn.Linear-style init (U[-1/sqrt(fan_in), +1/sqrt(fan_in)]).

    Weights are stored (in_features, out_features) — transposed vs PyTorch —
    so the kernel computes y = x @ W + b.  Returned in f32; `prepare_params`
    pads + casts them for the kernel.
    """
    keys = jax.random.split(key, 6)
    dims = [(NUM_INPUTS, HIDDEN1), (HIDDEN1, HIDDEN2), (HIDDEN2, NUM_OUTPUTS)]
    params = []
    for i, (fan_in, fan_out) in enumerate(dims):
        bound = 1.0 / math.sqrt(fan_in)
        w = jax.random.uniform(keys[2 * i], (fan_in, fan_out),
                               minval=-bound, maxval=bound, dtype=jnp.float32)
        bias = jax.random.uniform(keys[2 * i + 1], (1, fan_out),
                                  minval=-bound, maxval=bound, dtype=jnp.float32)
        params.extend([w, bias])
    return tuple(params)


def prepare_params(params):
    """Zero-pad HIDDEN2->128 and OUT->128; weights -> bf16, biases stay f32."""
    w1, b1, w2, b2, w3, b3 = params

    # layer 1: (784, 128) already lane-dense.
    w1p = w1.astype(jnp.bfloat16)
    b1p = b1                                                       # (1, 128) f32

    # layer 2: pad output columns 64 -> 128 with zeros.
    w2p = jnp.pad(w2, ((0, 0), (0, HIDDEN2_PAD - HIDDEN2))).astype(jnp.bfloat16)
    b2p = jnp.pad(b2, ((0, 0), (0, HIDDEN2_PAD - HIDDEN2)))        # f32

    # layer 3: pad input rows 64 -> 128 and output cols 10 -> 128 with zeros.
    w3p = jnp.pad(w3, ((0, HIDDEN2_PAD - HIDDEN2), (0, OUT_PAD - NUM_OUTPUTS))
                  ).astype(jnp.bfloat16)
    b3p = jnp.pad(b3, ((0, 0), (0, OUT_PAD - NUM_OUTPUTS)))        # f32

    return (w1p, b1p, w2p, b2p, w3p, b3p)


def _select_tiling(b):
    """Return (b_pad, tb): padded batch rows and per-step tile rows."""
    b8 = _round_up(b, 8)
    if b8 <= 16:
        # Tiny batch: single tile rounded to the 8-row sublane granule.
        return b8, b8
    if b8 <= 2 * TB_MAX:
        # Medium batch: exactly 2 tiles so v7x's two TensorCores both get work
        # (no-op on v5e/v6e); 16-row granularity keeps bf16 sublane packing.
        tb = _round_up(pl.cdiv(b8, 2), 16)
        return 2 * tb, tb
    # Large batch: pick tb from a divisor-friendly set minimizing padded rows
    # (ties go to the largest tile -> fewest grid steps).
    best_tb, best_pad = None, None
    for tb in (1024, 512, 256, 128):
        pad = _round_up(b8, tb) - b8
        if best_pad is None or pad < best_pad:
            best_tb, best_pad = tb, pad
    # TODO(synk): for very large ragged batches a main+tail pallas_call pair
    # would avoid re-materializing x for the (<=127-row) pad entirely.
    return _round_up(b8, best_tb), best_tb


def linear_net_forward(x, kparams):
    """x: (B, C, H, W) or (B, 784). kparams from prepare_params. Returns (B, 10) f32."""
    b = x.shape[0]
    x2d = x.reshape(b, -1)          # same as x.view(x.shape[0], -1)
    assert x2d.shape[1] == NUM_INPUTS

    b_pad, tb = _select_tiling(b)
    if b_pad != b:
        x2d = jnp.pad(x2d, ((0, b_pad - b), (0, 0)))
    n_tiles = b_pad // tb

    w1, b1, w2, b2, w3, b3 = kparams

    # Constant index_map -> weight/bias blocks stay VMEM-resident across steps.
    const2d = lambda arr: pl.BlockSpec(arr.shape, lambda i: (0, 0))

    flops = 2 * b_pad * (NUM_INPUTS * HIDDEN1
                         + HIDDEN1 * HIDDEN2_PAD
                         + HIDDEN2_PAD * OUT_PAD)
    bytes_accessed = (b_pad * NUM_INPUTS * 4                      # f32 x read
                      + (w1.size + w2.size + w3.size) * 2         # bf16 weights
                      + (b1.size + b2.size + b3.size) * 4         # f32 biases
                      + b_pad * OUT_PAD * 2)                      # bf16 out write

    out = pl.pallas_call(
        _mlp_kernel,
        out_shape=jax.ShapeDtypeStruct((b_pad, OUT_PAD), jnp.bfloat16),
        grid_spec=pl.GridSpec(
            grid=(n_tiles,),
            in_specs=[
                pl.BlockSpec((tb, NUM_INPUTS), lambda i: (i, 0)),  # f32 x tile
                const2d(w1), const2d(b1),
                const2d(w2), const2d(b2),
                const2d(w3), const2d(b3),
            ],
            out_specs=pl.BlockSpec((tb, OUT_PAD), lambda i: (i, 0)),
        ),
        compiler_params=pltpu.CompilerParams(
            dimension_semantics=("parallel",),
            vmem_limit_bytes=32 * 1024 * 1024),
        cost_estimate=pl.CostEstimate(flops=flops, transcendentals=0,
                                      bytes_accessed=bytes_accessed),
    )(x2d, w1, b1, w2, b2, w3, b3)

    # Strip batch padding and the lane padding of the 10-wide logits.
    return out[:b, :NUM_OUTPUTS].astype(jnp.float32)


def _reference_forward(x, kparams):
    """Pure-JAX reference with the same quantization points as the kernel."""
    w1, b1, w2, b2, w3, b3 = kparams
    x2d = x.reshape(x.shape[0], -1)
    xb = x2d.astype(jnp.bfloat16).astype(jnp.float32)
    h1 = xb @ w1.astype(jnp.float32) + b1
    h2 = h1.astype(jnp.bfloat16).astype(jnp.float32) @ w2.astype(jnp.float32) + b2
    h3 = h2.astype(jnp.bfloat16).astype(jnp.float32) @ w3.astype(jnp.float32) + b3
    h3 = h3.astype(jnp.bfloat16).astype(jnp.float32)   # kernel stores bf16 logits
    return h3[:, :NUM_OUTPUTS]


if __name__ == "__main__":
    key = jax.random.PRNGKey(0)
    k_x, k_p = jax.random.split(key)

    # MNIST-like input: batch=8, 1x28x28 images (NCHW), flattened in forward.
    x = jax.random.normal(k_x, (8, 1, 28, 28), dtype=jnp.float32)
    params = init_params(k_p)
    kparams = prepare_params(params)

    out = linear_net_forward(x, kparams)
    out = jax.block_until_ready(out)

    ref = _reference_forward(x, kparams)
    assert out.shape == (8, NUM_OUTPUTS)
    assert jnp.allclose(out, ref, atol=1e-2, rtol=1e-2), \
        float(jnp.max(jnp.abs(out - ref)))

    print("KERNEL_OK")
</pallas_src>

<mosaic_0001>
module attributes {stable_mosaic.version = 11 : i64} {
  func.func @_mlp_kernel(%arg0: i32, %arg1: memref<8x784xf32, #tpu.memory_space<vmem>>, %arg2: memref<784x128xbf16, #tpu.memory_space<vmem>>, %arg3: memref<1x128xf32, #tpu.memory_space<vmem>>, %arg4: memref<128x128xbf16, #tpu.memory_space<vmem>>, %arg5: memref<1x128xf32, #tpu.memory_space<vmem>>, %arg6: memref<128x128xbf16, #tpu.memory_space<vmem>>, %arg7: memref<1x128xf32, #tpu.memory_space<vmem>>, %arg8: memref<8x128xbf16, #tpu.memory_space<vmem>>) attributes {dimension_semantics = [#tpu.dimension_semantics<parallel>], iteration_bounds = array<i64: 1>, scalar_prefetch = 0 : i64, scratch_operands = 0 : i64, tpu.core_type = #tpu.core_type<tc>, window_params = [{transform_indices = @transform_0, window_bounds = array<i64: 8, 784>}, {pipeline_mode = #tpu.pipeline_mode<synchronous>, transform_indices = @transform_1, window_bounds = array<i64: 784, 128>}, {pipeline_mode = #tpu.pipeline_mode<synchronous>, transform_indices = @transform_2, window_bounds = array<i64: 1, 128>}, {pipeline_mode = #tpu.pipeline_mode<synchronous>, transform_indices = @transform_3, window_bounds = array<i64: 128, 128>}, {pipeline_mode = #tpu.pipeline_mode<synchronous>, transform_indices = @transform_4, window_bounds = array<i64: 1, 128>}, {pipeline_mode = #tpu.pipeline_mode<synchronous>, transform_indices = @transform_5, window_bounds = array<i64: 128, 128>}, {pipeline_mode = #tpu.pipeline_mode<synchronous>, transform_indices = @transform_6, window_bounds = array<i64: 1, 128>}, {transform_indices = @transform_7, window_bounds = array<i64: 8, 128>}]} {
    %c0 = arith.constant 0 : index
    %c0_0 = arith.constant 0 : index
    %0 = vector.load %arg1[%c0, %c0_0] : memref<8x784xf32, #tpu.memory_space<vmem>>, vector<8x784xf32>
    %1 = arith.truncf %0 : vector<8x784xf32> to vector<8x784xbf16>
    %c0_1 = arith.constant 0 : index
    %c0_2 = arith.constant 0 : index
    %2 = vector.load %arg2[%c0_1, %c0_2] : memref<784x128xbf16, #tpu.memory_space<vmem>>, vector<784x128xbf16>
    %cst = arith.constant dense<0.000000e+00> : vector<8x128xf32>
    %3 = tpu.matmul %1, %2, %cst {dimension_numbers = #tpu.dot_dimension_numbers<[1], [0], [0], [1], [0, 0, 1, 1], [], []>} : vector<8x784xbf16>, vector<784x128xbf16>, vector<8x128xf32> -> vector<8x128xf32>
    %c0_3 = arith.constant 0 : index
    %c0_4 = arith.constant 0 : index
    %4 = vector.load %arg3[%c0_3, %c0_4] : memref<1x128xf32, #tpu.memory_space<vmem>>, vector<1x128xf32>
    %5 = vector.broadcast %4 : vector<1x128xf32> to vector<8x128xf32>
    %6 = arith.addf %3, %5 : vector<8x128xf32>
    %7 = arith.truncf %6 : vector<8x128xf32> to vector<8x128xbf16>
    %c0_5 = arith.constant 0 : index
    %c0_6 = arith.constant 0 : index
    %8 = vector.load %arg4[%c0_5, %c0_6] : memref<128x128xbf16, #tpu.memory_space<vmem>>, vector<128x128xbf16>
    %cst_7 = arith.constant dense<0.000000e+00> : vector<8x128xf32>
    %9 = tpu.matmul %7, %8, %cst_7 {dimension_numbers = #tpu.dot_dimension_numbers<[1], [0], [0], [1], [0, 0, 1, 1], [], []>} : vector<8x128xbf16>, vector<128x128xbf16>, vector<8x128xf32> -> vector<8x128xf32>
    %c0_8 = arith.constant 0 : index
    %c0_9 = arith.constant 0 : index
    %10 = vector.load %arg5[%c0_8, %c0_9] : memref<1x128xf32, #tpu.memory_space<vmem>>, vector<1x128xf32>
    %11 = vector.broadcast %10 : vector<1x128xf32> to vector<8x128xf32>
    %12 = arith.addf %9, %11 : vector<8x128xf32>
    %13 = arith.truncf %12 : vector<8x128xf32> to vector<8x128xbf16>
    %c0_10 = arith.constant 0 : index
    %c0_11 = arith.constant 0 : index
    %14 = vector.load %arg6[%c0_10, %c0_11] : memref<128x128xbf16, #tpu.memory_space<vmem>>, vector<128x128xbf16>
    %cst_12 = arith.constant dense<0.000000e+00> : vector<8x128xf32>
    %15 = tpu.matmul %13, %14, %cst_12 {dimension_numbers = #tpu.dot_dimension_numbers<[1], [0], [0], [1], [0, 0, 1, 1], [], []>} : vector<8x128xbf16>, vector<128x128xbf16>, vector<8x128xf32> -> vector<8x128xf32>
    %c0_13 = arith.constant 0 : index
    %c0_14 = arith.constant 0 : index
    %16 = vector.load %arg7[%c0_13, %c0_14] : memref<1x128xf32, #tpu.memory_space<vmem>>, vector<1x128xf32>
    %17 = vector.broadcast %16 : vector<1x128xf32> to vector<8x128xf32>
    %18 = arith.addf %15, %17 : vector<8x128xf32>
    %19 = arith.truncf %18 : vector<8x128xf32> to vector<8x128xbf16>
    %c0_15 = arith.constant 0 : index
    %c0_16 = arith.constant 0 : index
    %20 = vector.load %arg8[%c0_15, %c0_16] : memref<8x128xbf16, #tpu.memory_space<vmem>>, vector<8x128xbf16>
    tpu.vector_store %arg8[%c0_15, %c0_16], %19 {strides = array<i32>} : memref<8x128xbf16, #tpu.memory_space<vmem>>, vector<8x128xbf16>,
    return
  }
  func.func @transform_0(%arg0: i32) -> (i32, i32) {
    %c0_i32 = arith.constant 0 : i32
    %c0_i32_0 = arith.constant 0 : i32
    return %arg0, %c0_i32 : i32, i32
  }
  func.func @transform_1(%arg0: i32) -> (i32, i32) {
    %c0_i32 = arith.constant 0 : i32
    %c0_i32_0 = arith.constant 0 : i32
    %c0_i32_1 = arith.constant 0 : i32
    return %c0_i32, %c0_i32_0 : i32, i32
  }
  func.func @transform_2(%arg0: i32) -> (i32, i32) {
    %c0_i32 = arith.constant 0 : i32
    %c0_i32_0 = arith.constant 0 : i32
    %c0_i32_1 = arith.constant 0 : i32
    return %c0_i32, %c0_i32_0 : i32, i32
  }
  func.func @transform_3(%arg0: i32) -> (i32, i32) {
    %c0_i32 = arith.constant 0 : i32
    %c0_i32_0 = arith.constant 0 : i32
    %c0_i32_1 = arith.constant 0 : i32
    return %c0_i32, %c0_i32_0 : i32, i32
  }
  func.func @transform_4(%arg0: i32) -> (i32, i32) {
    %c0_i32 = arith.constant 0 : i32
    %c0_i32_0 = arith.constant 0 : i32
    %c0_i32_1 = arith.constant 0 : i32
    return %c0_i32, %c0_i32_0 : i32, i32
  }
  func.func @transform_5(%arg0: i32) -> (i32, i32) {
    %c0_i32 = arith.constant 0 : i32
    %c0_i32_0 = arith.constant 0 : i32
    %c0_i32_1 = arith.constant 0 : i32
    return %c0_i32, %c0_i32_0 : i32, i32
  }
  func.func @transform_6(%arg0: i32) -> (i32, i32) {
    %c0_i32 = arith.constant 0 : i32
    %c0_i32_0 = arith.constant 0 : i32
    %c0_i32_1 = arith.constant 0 : i32
    return %c0_i32, %c0_i32_0 : i32, i32
  }
  func.func @transform_7(%arg0: i32) -> (i32, i32) {
    %c0_i32 = arith.constant 0 : i32
    %c0_i32_0 = arith.constant 0 : i32
    return %arg0, %c0_i32 : i32, i32
  }
}

</mosaic_0001>

<bundles_post_ra>
// kernel: tpu_custom_call.1
= control target key start
LH: loop header
LB: loop body
LE: loop exit
PB: predicated region body
PF: predicated region fallthrough
CT: control target
= control target key end

     0   :  { %12 = vsyncpa [#allocation3], 0  ;;  %s1314_s0 = inlined_call_operand.hbm [shape: f32[8,784], index: 0, kind: input, shape index: {}]   ;;  %s1315_s1 = inlined_call_operand.hbm [shape: bf16[784,128], index: 1, kind: input, shape index: {}]   ;;  %s1316_s2 = inlined_call_operand.vmem [shape: f32[1,128], index: 2, kind: input, shape index: {}]   ;;  %s1317_s3 = inlined_call_operand.hbm [shape: bf16[128,128], index: 3, kind: input, shape index: {}]   ;;  %s1318_s4 = inlined_call_operand.vmem [shape: f32[1,128], index: 4, kind: input, shape index: {}]   ;;  %s1319_s5 = inlined_call_operand.hbm [shape: bf16[128,128], index: 5, kind: input, shape index: {}]   ;;  %s1320_s6 = inlined_call_operand.vmem [shape: f32[1,128], index: 6, kind: input, shape index: {}]   ;;  %s1321_s7 = inlined_call_operand.hbm [shape: bf16[8,128], index: 7, kind: output, shape index: {}]  }
   0x1   :  { %13 = vsyncpa [#allocation6], 0 }
   0x2   :  { %14 = vsyncpa [#allocation9], 0  ;;  %s31_s26 = sshll.u32 %s1315_s1, 4  ;;  %s32_s26 = int_to_ptr.hbm [resolvable:$true] %s31_s26 }
   0x3   :  { %15 = vsyncpa [#allocation4], 0  ;;  %s1243_s27 = smov [#allocation5]   ;;  %s21_s8 = sshll.u32 %s1314_s0, 4  ;;  %s22_s8 = int_to_ptr.hbm [resolvable:$true] %s21_s8 }
   0x4   :  { %s33_s28 = sshll.u32 %s1243_s27, 4  ;;  %s1244_s9 = smov 64   ;;  %s34_s28 = int_to_ptr.vmem [resolvable:$true] %s33_s28 }
   0x5   :  { %s1245_s10 = smov 4   ;;  %s1246_s11 = smov [#allocation2]  }
   0x6   :  { %39 = dma.hbm_to_vmem [thread:$0]  %s32_s26, 6272, %s34_s28, [#allocation6], %s1244_s9, %s1244_s9, %s1245_s10  }
   0x7   :  { %s23_s12 = sshll.u32 %s1246_s11, 4  ;;  %s46_s15 = sshll.u32 %s1317_s3, 4  ;;  %s24_s12 = int_to_ptr.vmem [resolvable:$true] %s23_s12  ;;  %s47_s15 = int_to_ptr.hbm [resolvable:$true] %s46_s15 }
   0x8   :  { %26 = dma.hbm_to_vmem [thread:$0]  %s22_s8, 896, %s24_s12, [#allocation3]  }
   0x9   :  { %s61_s17 = sshll.u32 %s1319_s5, 4  ;;  %s1247_s18 = smov [#allocation7]   ;;  %s62_s17 = int_to_ptr.hbm [resolvable:$true] %s61_s17 }
   0xa   :  { %s48_s19 = sshll.u32 %s1247_s18, 4  ;;  %s1248_s0 = smov [#allocation8]   ;;  %s49_s19 = int_to_ptr.vmem [resolvable:$true] %s48_s19 }
   0xb   :  { %54 = dma.hbm_to_vmem [thread:$0]  %s47_s15, 1024, %s49_s19, [#allocation6], %s1244_s9, %s1244_s9, %s1245_s10  }
   0xc   :  { %s63_s20 = sshll.u32 %s1248_s0, 4  ;;  %s64_s20 = int_to_ptr.vmem [resolvable:$true] %s63_s20 }
   0xd   :  { %69 = dma.hbm_to_vmem [thread:$0]  %s62_s17, 1024, %s64_s20, [#allocation9], %s1244_s9, %s1244_s9, %s1245_s10  }
   0xe   :  { %1235 = dma.done.wait [#allocation3], 896  }
   0xf   :  { %1236 = vsyncadd [#allocation3], 4294966400 }
  0x10   :  { %1237 = dma.done.wait [#allocation6], 7296  }
  0x11   :  { %1238 = vsyncadd [#allocation6], 4294960000 }
  0x12   :  { %1239 = dma.done.wait [#allocation9], 1024  }
  0x13   :  { %1240 = vsyncadd [#allocation9], 4294966272  ;;  %v1047_v0 = vld [vmem:[#allocation5 + $0x38] sm:$0xff]  ;;  %v1046_v3 = vld [vmem:[#allocation5 + $0x30] sm:$0xff]  ;;  %vm499_vm0 = vcmask 130048   ;;  %s1249_s24 = smov [#allocation10]  }
  0x14   :  { %v1055_v1 = vld [vmem:[#allocation5 + $0x78] sm:$0xff]  ;;  %503 = vmatpush.bf16.msra.mxu0 %v1047_v0  ;;  %v1054_v4 = vld [vmem:[#allocation5 + $0x70] sm:$0xff]  ;;  %v1045_v8 = vld [vmem:[#allocation5 + $0x28] sm:$0xff]  ;;  %s765_s25 = sshll.u32 %s1249_s24, 4  ;;  %s767_s28 = sshll.u32 %s1321_s7, 4  ;;  %s766_s25 = int_to_ptr.vmem [resolvable:$true] %s765_s25  ;;  %s768_s28 = int_to_ptr.hbm [resolvable:$true] %s767_s28 }
  0x15   :  { %v1063_v2 = vld [vmem:[#allocation5 + $0xb8] sm:$0xff]  ;;  %516 = vmatpush.bf16.msra.mxu1 %v1055_v1  ;;  %v1062_v5 = vld [vmem:[#allocation5 + $0xb0] sm:$0xff]  ;;  %v1053_v9 = vld [vmem:[#allocation5 + $0x68] sm:$0xff] }
  0x16   :  { %529 = vmatpush.bf16.msra.mxu2 %v1063_v2  ;;  %v1071_v6 = vld [vmem:[#allocation5 + $0xf8] sm:$0xff]  ;;  %v1070_v7 = vld [vmem:[#allocation5 + $0xf0] sm:$0xff]  ;;  %v1061_v10 = vld [vmem:[#allocation5 + $0xa8] sm:$0xff] }
  0x17   :  { %542 = vmatpush.bf16.msra.mxu3 %v1071_v6  ;;  %v1069_v11 = vld [vmem:[#allocation5 + $0xe8] sm:$0xff]  ;;  %v1044_v12 = vld [vmem:[#allocation5 + $0x20] sm:$0xff]  ;;  %v1043_v16 = vld [vmem:[#allocation5 + $0x18] sm:$0xff] }
  0x18   :  { %504 = vmatpush.bf16.msra.mxu0 %v1046_v3  ;;  %v1052_v13 = vld [vmem:[#allocation5 + $0x60] sm:$0xff]  ;;  %v1051_v17 = vld [vmem:[#allocation5 + $0x58] sm:$0xff]  ;;  %v1042_v20 = vld [vmem:[#allocation5 + $0x10] sm:$0xff] }
  0x19   :  { %517 = vmatpush.bf16.msra.mxu1 %v1054_v4  ;;  %v1060_v14 = vld [vmem:[#allocation5 + $0xa0] sm:$0xff]  ;;  %v1059_v18 = vld [vmem:[#allocation5 + $0x98] sm:$0xff]  ;;  %v1050_v21 = vld [vmem:[#allocation5 + $0x50] sm:$0xff] }
  0x1a   :  { %530 = vmatpush.bf16.msra.mxu2 %v1062_v5  ;;  %v1068_v15 = vld [vmem:[#allocation5 + $0xe0] sm:$0xff]  ;;  %v1067_v19 = vld [vmem:[#allocation5 + $0xd8] sm:$0xff]  ;;  %v1058_v22 = vld [vmem:[#allocation5 + $0x90] sm:$0xff] }
  0x1b   :  { %543 = vmatpush.bf16.msra.mxu3 %v1070_v7  ;;  %v1066_v23 = vld [vmem:[#allocation5 + $0xd0] sm:$0xff]  ;;  %v1041_v24 = vld [vmem:[#allocation5 + $0x8] sm:$0xff]  ;;  %v1040_v27 = vld [vmem:[#allocation5] sm:$0xff] }
  0x1c   :  { %505 = vmatpush.bf16.msra.mxu0 %v1045_v8  ;;  %v1049_v25 = vld [vmem:[#allocation5 + $0x48] sm:$0xff]  ;;  %v1048_v29 = vld [vmem:[#allocation5 + $0x40] sm:$0xff]  ;;  %v90_v31 = vld [vmem:[#allocation2 + $0x8] sm:$0xff] }
  0x1d   :  { %518 = vmatpush.bf16.msra.mxu1 %v1053_v9  ;;  %v1057_v26 = vld [vmem:[#allocation5 + $0x88] sm:$0xff]  ;;  %v1079_v32 = vld [vmem:[#allocation5 + $0x138] sm:$0xff]  ;;  %v1056_v34 = vld [vmem:[#allocation5 + $0x80] sm:$0xff]  ;;  %v97_v37 = vpack.c.bf16 %v90_v31, %v90_v31 }
  0x1e   :  { %531 = vmatpush.bf16.msra.mxu2 %v1061_v10  ;;  %v1065_v28 = vld [vmem:[#allocation5 + $0xc8] sm:$0xff]  ;;  %v1087_v33 = vld [vmem:[#allocation5 + $0x178] sm:$0xff]  ;;  %v1064_v38 = vld [vmem:[#allocation5 + $0xc0] sm:$0xff] }
  0x1f   :  { %544 = vmatpush.bf16.msra.mxu3 %v1069_v11  ;;  %v89_v30 = vld [vmem:[#allocation2] sm:$0xff]  ;;  %v91_v35 = vld [vmem:[#allocation2 + $0x10] sm:$0xff]  ;;  %v1088_v39 = vld [vmem:[#allocation5 + $0x180] sm:$0xff] }
  0x20   :  { %506 = vmatpush.bf16.msra.mxu0 %v1044_v12  ;;  %v96_v36 = vpack.c.bf16 %v89_v30, %v89_v30  ;;  %v92_v40 = vld [vmem:[#allocation2 + $0x18] sm:$0xff]  ;;  %v1078_v41 = vld [vmem:[#allocation5 + $0x130] sm:$0xff]  ;;  %v98_v43 = vpack.c.bf16 %v91_v35, %v91_v35  ;;  %v1077_v45 = vld [vmem:[#allocation5 + $0x128] sm:$0xff] }
  0x21   :  { %519 = vmatpush.bf16.msra.mxu1 %v1052_v13  ;;  %v1086_v42 = vld [vmem:[#allocation5 + $0x170] sm:$0xff]  ;;  %v99_v44 = vpack.c.bf16 %v92_v40, %v92_v40  ;;  %v1085_v46 = vld [vmem:[#allocation5 + $0x168] sm:$0xff]  ;;  %v1076_v47 = vld [vmem:[#allocation5 + $0x120] sm:$0xff] }
  0x22   :  { %532 = vmatpush.bf16.msra.mxu2 %v1060_v14  ;;  %v1084_v48 = vld [vmem:[#allocation5 + $0x160] sm:$0xff]  ;;  %v1075_v49 = vld [vmem:[#allocation5 + $0x118] sm:$0xff]  ;;  %v1074_v52 = vld [vmem:[#allocation5 + $0x110] sm:$0xff] }
  0x23   :  { %545 = vmatpush.bf16.msra.mxu3 %v1068_v15  ;;  %v1083_v50 = vld [vmem:[#allocation5 + $0x158] sm:$0xff]  ;;  %v1082_v53 = vld [vmem:[#allocation5 + $0x150] sm:$0xff]  ;;  %v1073_v55 = vld [vmem:[#allocation5 + $0x108] sm:$0xff] }
  0x24   :  { %507 = vmatpush.bf16.msra.mxu0 %v1043_v16  ;;  %v95_v51 = vld [vmem:[#allocation2 + $0x30] sm:$0xff]  ;;  %v1081_v56 = vld [vmem:[#allocation5 + $0x148] sm:$0xff]  ;;  %v1072_v57 = vld [vmem:[#allocation5 + $0x100] sm:$0xff] }
  0x25   :  { %520 = vmatpush.bf16.msra.mxu1 %v1051_v17  ;;  %v102_v54 = vpack.c.bf16 %v95_v51, %v95_v51  ;;  %v1080_v58 = vld [vmem:[#allocation5 + $0x140] sm:$0xff]  ;;  %v93_v59 = vld [vmem:[#allocation2 + $0x20] sm:$0xff]  ;;  %v94_v60 = vld [vmem:[#allocation2 + $0x28] sm:$0xff] }
  0x26   :  { %533 = vmatpush.bf16.msra.mxu2 %v1059_v18  ;;  %v100_v61 = vpack.c.bf16 %v93_v59, %v93_v59  ;;  %v101_v62 = vpack.c.bf16 %v94_v60, %v94_v60  ;;  %v1096_v63 = vld [vmem:[#allocation7 + $0x38] sm:$0xff]  ;;  %v1095_v0 = vld [vmem:[#allocation7 + $0x30] sm:$0xff]  ;;  %v1094_v1 = vld [vmem:[#allocation7 + $0x28] sm:$0xff] }
  0x27   :  { %546 = vmatpush.bf16.msra.mxu3 %v1067_v19  ;;  %v1093_v2 = vld [vmem:[#allocation7 + $0x20] sm:$0xff]  ;;  %v1092_v3 = vld [vmem:[#allocation7 + $0x18] sm:$0xff]  ;;  %v1091_v4 = vld [vmem:[#allocation7 + $0x10] sm:$0xff] }
  0x28   :  { %508 = vmatpush.bf16.msra.mxu0 %v1042_v20  ;;  %v1090_v5 = vld [vmem:[#allocation7 + $0x8] sm:$0xff]  ;;  %v1089_v8 = vld [vmem:[#allocation7] sm:$0xff]  ;;  %v1104_v9 = vld [vmem:[#allocation8 + $0x38] sm:$0xff] }
  0x29   :  { %521 = vmatpush.bf16.msra.mxu1 %v1050_v21  ;;  %v1103_v12 = vld [vmem:[#allocation8 + $0x30] sm:$0xff]  ;;  %v1112_v15 = vld [vmem:[%s1316_s2] ss:$0 sm:$0xff]  ;;  %v1102_v16 = vld [vmem:[#allocation8 + $0x28] sm:$0xff] }
  0x2a   :  { %534 = vmatpush.bf16.msra.mxu2 %v1058_v22  ;;  %v1101_v18 = vld [vmem:[#allocation8 + $0x20] sm:$0xff]  ;;  %v1100_v22 = vld [vmem:[#allocation8 + $0x18] sm:$0xff] }
  0x2b   :  { %547 = vmatpush.bf16.msra.mxu3 %v1066_v23 }
  0x2c   :  { %509 = vmatpush.bf16.msra.mxu0 %v1041_v24  ;;  %v1099_v24 = vld [vmem:[#allocation8 + $0x10] sm:$0xff] }
  0x2d   :  { %522 = vmatpush.bf16.msra.mxu1 %v1049_v25 }
  0x2e   :  { %535 = vmatpush.bf16.msra.mxu2 %v1057_v26 }
  0x2f   :  { %548 = vmatpush.bf16.msra.mxu3 %v1065_v28 }
  0x30   :  { %510 = vmatpush.bf16.msra.mxu0 %v1040_v27  ;;  %v1098_v27 = vld [vmem:[#allocation8 + $0x8] sm:$0xff] }
  0x31   :  { %523 = vmatpush.bf16.msra.mxu1 %v1048_v29 }
  0x32   :  { %536 = vmatpush.bf16.msra.mxu2 %v1056_v34 }
  0x33   :  { %511 = vmatmul.bf16.vlgmr.msra.gmra.mxu0 %v96_v36  ;;  %549 = vmatpush.bf16.msra.mxu3 %v1064_v38  ;;  %v1113_v38 = vld [vmem:[%s1318_s4] ss:$0 sm:$0xff] }
  0x34   :  { %555 = vmatpush.bf16.msrb.mxu0 %v1079_v32  ;;  %524 = vmatmul.bf16.vlgmr.msra.gmra.mxu1 %v97_v37  ;;  %v1097_v37 = vld [vmem:[#allocation8] sm:$0xff] }
  0x35   :  { %568 = vmatpush.bf16.msrb.mxu1 %v1087_v33  ;;  %537 = vmatmul.bf16.vlgmr.msra.gmra.mxu2 %v98_v43  ;;  %v1114_v43 = vld [vmem:[%s1320_s6] ss:$0 sm:$0xff] }
  0x36   :  { %588 = vmatpush.bf16.msrb.mxu2 %v1088_v39  ;;  %550 = vmatmul.bf16.vlgmr.msra.gmra.mxu3 %v99_v44 }
  0x37   :  { %663 = vmatpush.bf16.msrb.mxu3 %v1096_v63 }
  0x38   :  { %556 = vmatpush.bf16.msrb.mxu0 %v1078_v41 }
  0x39   :  { %569 = vmatpush.bf16.msrb.mxu1 %v1086_v42 }
  0x3a   :  { %745 = vmatpush.bf16.msra.mxu2 %v1104_v9 }
  0x3b   :  { %664 = vmatpush.bf16.msrb.mxu3 %v1095_v0 }
  0x3c   :  { %557 = vmatpush.bf16.msrb.mxu0 %v1077_v45 }
  0x3d   :  { %570 = vmatpush.bf16.msrb.mxu1 %v1085_v46 }
  0x3e   :  { %746 = vmatpush.bf16.msra.mxu2 %v1103_v12 }
  0x3f   :  { %665 = vmatpush.bf16.msrb.mxu3 %v1094_v1 }
  0x40   :  { %558 = vmatpush.bf16.msrb.mxu0 %v1076_v47 }
  0x41   :  { %571 = vmatpush.bf16.msrb.mxu1 %v1084_v48 }
  0x42   :  { %747 = vmatpush.bf16.msra.mxu2 %v1102_v16 }
  0x43   :  { %666 = vmatpush.bf16.msrb.mxu3 %v1093_v2 }
  0x44   :  { %559 = vmatpush.bf16.msrb.mxu0 %v1075_v49 }
  0x45   :  { %572 = vmatpush.bf16.msrb.mxu1 %v1083_v50  ;;  %975 = vmatmul.msk.bf16.vlgmr.msrb.gmra.mxu2 %vm499_vm0, %v102_v54 }
  0x46   :  { %748 = vmatpush.bf16.msra.mxu2 %v1101_v18 }
  0x47   :  { %667 = vmatpush.bf16.msrb.mxu3 %v1092_v3 }
  0x48   :  { %560 = vmatpush.bf16.msrb.mxu0 %v1074_v52 }
  0x49   :  { %573 = vmatpush.bf16.msrb.mxu1 %v1082_v53 }
  0x4a   :  { %749 = vmatpush.bf16.msra.mxu2 %v1100_v22 }
  0x4b   :  { %668 = vmatpush.bf16.msrb.mxu3 %v1091_v4 }
  0x4c   :  { %561 = vmatpush.bf16.msrb.mxu0 %v1073_v55 }
  0x4d   :  { %574 = vmatpush.bf16.msrb.mxu1 %v1081_v56 }
  0x4e   :  { %750 = vmatpush.bf16.msra.mxu2 %v1099_v24 }
  0x4f   :  { %669 = vmatpush.bf16.msrb.mxu3 %v1090_v5 }
  0x50   :  { %562 = vmatpush.bf16.msrb.mxu0 %v1072_v57 }
  0x51   :  { %575 = vmatpush.bf16.msrb.mxu1 %v1080_v58 }
  0x52   :  { %751 = vmatpush.bf16.msra.mxu2 %v1098_v27 }
  0x53   :  { %563 = vmatmul.bf16.vlgmr.msrb.gmra.mxu0 %v100_v61  ;;  %670 = vmatpush.bf16.msrb.mxu3 %v1089_v8 }
  0x54   :  { %576 = vmatmul.bf16.vlgmr.msrb.gmra.mxu1 %v101_v62 }
  0x56   :  { %752 = vmatpush.bf16.msra.mxu2 %v1097_v37 }
  0xb0   :  { %v512_v6 = vpop.f32.mrf.mxu0 }
  0xb1   :  { %v525_v7 = vpop.f32.mrf.mxu1  ;;  %v513_v17 = vadd.f32 %v1112_v15, %v512_v6 }
  0xb3   :  { %v526_v21 = vadd.f32 %v525_v7, %v513_v17 }
  0xb8   :  { %v514_v10 = vpop.f32.mrf.mxu0  ;;  %v538_v13 = vpop.f32.mrf.mxu2 }
  0xb9   :  { %v527_v11 = vpop.f32.mrf.mxu1  ;;  %v551_v14 = vpop.f32.mrf.mxu3  ;;  %v539_v23 = vadd.f32 %v538_v13, %v526_v21 }
  0xbb   :  { %v552_v26 = vadd.f32 %v551_v14, %v539_v23 }
  0xc0   :  { %v540_v19 = vpop.f32.mrf.mxu2 }
  0xc1   :  { %v553_v20 = vpop.f32.mrf.mxu3 }
  0xc8   :  { %v590_v25 = vpop.f32.mrf.mxu2 }
  0xd0   :  { %v564_v28 = vpop.f32.mrf.mxu0  ;;  %v592_v32 = vpop.f32.mrf.mxu2 }
  0xd1   :  { %v577_v29 = vpop.f32.mrf.mxu1  ;;  %v565_v30 = vadd.f32 %v564_v28, %v552_v26 }
  0xd3   :  { %v578_v31 = vadd.f32 %v577_v29, %v565_v30 }
  0xd5   :  { %v591_v33 = vadd.f32 %v590_v25, %v578_v31 }
  0xd7   :  { %v594_v34 = vpack.c.bf16 %v591_v33, %v591_v33 }
  0xd8   :  { %v566_v35 = vpop.f32.mrf.mxu0 }
  0xd9   :  { %v579_v36 = vpop.f32.mrf.mxu1  ;;  %671 = vmatmul.bf16.vlgmr.msrb.gmra.mxu3 %v594_v34 }
 0x15c   :  { %v672_v39 = vpop.f32.mrf.mxu3 }
 0x15d   :  { %v673_v40 = vadd.f32 %v1113_v38, %v672_v39 }
 0x15f   :  { %v676_v41 = vpack.c.bf16 %v673_v40, %v673_v40 }
 0x161   :  { %753 = vmatmul.bf16.vlgmr.msra.gmra.mxu2 %v676_v41 }
 0x164   :  { %v674_v42 = vpop.f32.mrf.mxu3 }
 0x1e4   :  { %v754_v44 = vpop.f32.mrf.mxu2 }
 0x1e5   :  { %v755_v45 = vadd.f32 %v1114_v43, %v754_v44 }
 0x1e7   :  { %v758_v46 = vpack.c.bf16 %v755_v45, %v755_v45 }
 0x1e9   :  { %759 = vst [vmem:[#allocation10] sm:$0xf] %v758_v46 }
 0x1ea   :  { %770 = dma.vmem_to_hbm [thread:$0]  %s766_s25, 64, %s768_s28, [#allocation4]  }
 0x1ec   :  { %v756_v47 = vpop.f32.mrf.mxu2 }
 0x1ed   :  { %1241 = dma.done.wait [#allocation4], 64  }
 0x1ee   :  { %1242 = vsyncadd [#allocation4], 4294967232 }
 0x1ef   :  { %775 = vsyncpa [#allocation3], 1 }
 0x1f0   :  { %776 = vsyncpa [#allocation6], 1 }
 0x1f1   :  { %777 = vsyncpa [#allocation9], 1 }
 0x1f2   :  { %778 = vsyncpa [#allocation4], 1 }

</bundles_post_ra>
